<compile_context>
chip_gen: v5e
topology: v5e:2x2
jax: 0.10.0
libtpu: 0.0.40
codegen_flags: <defaults>
</compile_context>

<pallas_src>
import functools

import jax
import jax.numpy as jnp
from jax import lax
from jax.experimental import pallas as pl
from jax.experimental.pallas import tpu as pltpu


def _focal_ce_kernel(logits_ref, targets_ref, out_ref, *,
                     batch_size, tile_rows, tiles_per_split, num_classes):
    # logits_ref : [TB, C]   native dtype, VMEM
    # targets_ref: [TB, 1]   int32,        VMEM
    # out_ref    : [1, 1, 1] f32 per-split partial CE sum (resident across axis 1)
    i = pl.program_id(1)

    @pl.when(i == 0)
    def _():
        out_ref[...] = jnp.zeros_like(out_ref)

    xn = logits_ref[...]                                    # [TB, C] native dtype
    t = targets_ref[...]                                    # [TB, 1] int32

    # Row max and one-hot target gather on the native dtype (bf16 packs 2x per vreg).
    # NOTE: out-of-range targets silently contribute tgt=0 (row loss becomes its lse),
    # matching the previous kernel; nn.CrossEntropyLoss would error instead.
    m = jnp.max(xn, axis=-1, keepdims=True)                 # [TB, 1]
    col = lax.broadcasted_iota(jnp.int32, (1, num_classes), 1)          # [1, C] lane iota
    tgt = jnp.sum(jnp.where(col == t, xn, 0), axis=-1, keepdims=True)   # [TB, 1] exact

    # f32 softmax denominator on the shifted tile; the +m of the logsumexp cancels
    # against the -m folded into the gathered target:
    #   lse - x[t] = log(sum(exp(x - m))) + (m - x[t])
    m32 = m.astype(jnp.float32)                             # [TB, 1]
    xm = xn.astype(jnp.float32) - m32                       # [TB, C] f32 (single big temp)
    lse_m = jnp.log(jnp.sum(jnp.exp(xm), axis=-1, keepdims=True))       # [TB, 1]
    ce = lse_m + (m32 - tgt.astype(jnp.float32))            # [TB, 1] per-row CE

    # Mask rows past the true batch (partial last tile / duplicated clamped tile).
    # Mask stays downstream of the per-row math so padded-row NaN/Inf is discarded.
    block_idx = pl.program_id(0) * tiles_per_split + i
    row = lax.broadcasted_iota(jnp.int32, ce.shape, 0) + block_idx * tile_rows
    ce = jnp.where(row < batch_size, ce, 0.0)

    out_ref[...] = out_ref[...] + jnp.sum(ce)               # accumulate raw CE sum


def _vmem_capacity_bytes():
    try:
        return int(pltpu.get_tpu_info().vmem_capacity_bytes)
    except Exception:
        return 64 << 20                                     # conservative (v7x per-core)


def _vmem_limit_bytes(vmem_cap):
    # Leave headroom for Mosaic internals: 48 MiB on v7x (64 MiB), ~100 MiB on v5e/v6e.
    return int(max(32 << 20, min(vmem_cap - (16 << 20), 100 << 20)))


def _pick_tile_rows(batch, num_classes, itemsize, vmem_cap, tile_rows=None):
    """Largest batch tile whose full working set stays under ~half of VMEM."""
    sublane = max(8, 32 // max(int(itemsize), 1))           # f32: 8, bf16: 16, int8: 32
    if tile_rows is not None:
        return max(sublane, -(-int(tile_rows) // sublane) * sublane)
    b_pad = -(-batch // sublane) * sublane
    # Per-row working set: 2x double-buffered native logits row, ~3 f32-sized temporaries
    # (upcast/shifted tile, exp, reduce), one lane-padded int32 targets row + slack.
    # TODO(synk): if a single row (num_classes*itemsize) exceeds the budget, also tile the
    # class axis with an online (running-max) logsumexp accumulator.
    bytes_per_row = num_classes * (2 * itemsize + 12) + 1024
    rows = max((vmem_cap // 2) // bytes_per_row, sublane)
    rows = min(rows, 2048, b_pad)                           # amortize ~0.35us/step overhead
    return max((rows // sublane) * sublane, sublane)


def focal_loss(inputs, targets, alpha=1.0, gamma=2.0, tile_rows=None):
    """inputs: float[B, C] logits ; targets: int[B] class indices. Returns scalar f32."""
    B, C = inputs.shape
    targets_2d = targets.astype(jnp.int32).reshape(B, 1)

    vmem_cap = _vmem_capacity_bytes()
    tb = _pick_tile_rows(B, C, inputs.dtype.itemsize, vmem_cap, tile_rows)
    total_tiles = pl.cdiv(B, tb)
    num_splits = 2 if total_tiles >= 2 else 1               # feeds both TCs on v7x
    tiles_per_split = pl.cdiv(total_tiles, num_splits)
    last_tile = total_tiles - 1

    def in_map(c, i):
        # Clamp so an odd tile count never indexes past the array; the duplicated block's
        # rows are >= B and get masked inside the kernel.
        return (jnp.minimum(c * tiles_per_split + i, last_tile), 0)

    kernel = functools.partial(
        _focal_ce_kernel,
        batch_size=B, tile_rows=tb, tiles_per_split=tiles_per_split, num_classes=C)

    partials = pl.pallas_call(
        kernel,
        out_shape=jax.ShapeDtypeStruct((num_splits, 1, 1), jnp.float32),
        grid_spec=pltpu.PrefetchScalarGridSpec(
            num_scalar_prefetch=0,
            grid=(num_splits, tiles_per_split),
            in_specs=[
                pl.BlockSpec((tb, C), in_map),              # logits tile, native dtype
                pl.BlockSpec((tb, 1), in_map),              # targets column
            ],
            out_specs=pl.BlockSpec((1, 1, 1), lambda c, i: (c, 0, 0)),
        ),
        compiler_params=pltpu.CompilerParams(
            dimension_semantics=("parallel", "arbitrary"),  # split across TCs / sequential K
            vmem_limit_bytes=_vmem_limit_bytes(vmem_cap),
        ),
    )(inputs, targets_2d)

    # Focal math on the batch-mean CE as free scalar XLA ops (matches the PyTorch module).
    ce = jnp.sum(partials) / jnp.float32(B)
    pt = jnp.exp(-ce)
    return jnp.float32(alpha) * (1.0 - pt) ** jnp.float32(gamma) * ce


def _reference(inputs, targets, alpha=1.0, gamma=2.0):
    # pure-JAX reference (nn.CrossEntropyLoss mean + focal modulation on the mean)
    x = inputs.astype(jnp.float32)
    lse = jax.scipy.special.logsumexp(x, axis=-1)
    tgt = jnp.take_along_axis(x, targets[:, None], axis=-1)[:, 0]
    ce = jnp.mean(lse - tgt)
    pt = jnp.exp(-ce)
    return alpha * (1.0 - pt) ** gamma * ce


if __name__ == "__main__":
    # Test 1: module-sized toy shape, single tile / single split.
    k1, k2 = jax.random.split(jax.random.PRNGKey(0))
    B, C = 8, 16
    x1 = jax.random.normal(k1, (B, C), dtype=jnp.float32)
    t1 = jax.random.randint(k2, (B,), 0, C, dtype=jnp.int32)
    loss1 = focal_loss(x1, t1)
    jax.block_until_ready(loss1)
    assert jnp.allclose(loss1, _reference(x1, t1), rtol=1e-5, atol=1e-6), (
        loss1, _reference(x1, t1))

    # Test 2: multi-step grid + two-split accumulator path (forced small tile).
    k1, k2 = jax.random.split(jax.random.PRNGKey(1))
    B, C = 48, 16
    x2 = jax.random.normal(k1, (B, C), dtype=jnp.float32)
    t2 = jax.random.randint(k2, (B,), 0, C, dtype=jnp.int32)
    loss2 = focal_loss(x2, t2, tile_rows=16)
    jax.block_until_ready(loss2)
    assert jnp.allclose(loss2, _reference(x2, t2), rtol=1e-5, atol=1e-6), (
        loss2, _reference(x2, t2))

    # Test 3: batch not a multiple of the tile -> partial-tile masking path.
    k1, k2 = jax.random.split(jax.random.PRNGKey(2))
    B, C = 37, 16
    x3 = jax.random.normal(k1, (B, C), dtype=jnp.float32)
    t3 = jax.random.randint(k2, (B,), 0, C, dtype=jnp.int32)
    loss3 = focal_loss(x3, t3, tile_rows=16)
    jax.block_until_ready(loss3)
    assert jnp.allclose(loss3, _reference(x3, t3), rtol=1e-5, atol=1e-6), (
        loss3, _reference(x3, t3))

    # Test 4: bf16 logits streamed without a wrapper upcast (native-dtype max/gather path).
    x4 = x2.astype(jnp.bfloat16)
    loss4 = focal_loss(x4, t2, tile_rows=16)
    jax.block_until_ready(loss4)
    assert jnp.allclose(loss4, _reference(x4, t2), rtol=5e-2, atol=5e-2), (
        loss4, _reference(x4, t2))

    print("KERNEL_OK")
</pallas_src>

<mosaic_0001>
module attributes {stable_mosaic.version = 11 : i64} {
  func.func @_focal_ce_kernel(%arg0: i32, %arg1: i32, %arg2: memref<8x16xf32, #tpu.memory_space<vmem>>, %arg3: memref<8x1xi32, #tpu.memory_space<vmem>>, %arg4: memref<1x1x1xf32, #tpu.memory_space<vmem>>) attributes {dimension_semantics = [#tpu.dimension_semantics<parallel>, #tpu.dimension_semantics<arbitrary>], iteration_bounds = array<i64: 1, 1>, scalar_prefetch = 0 : i64, scratch_operands = 0 : i64, tpu.core_type = #tpu.core_type<tc>, window_params = [{transform_indices = @transform_0, window_bounds = array<i64: 8, 16>}, {transform_indices = @transform_1, window_bounds = array<i64: 8, 1>}, {transform_indices = @transform_2, window_bounds = array<i64: 1, 1, 1>}]} {
    %c0_i32 = arith.constant 0 : i32
    %0 = arith.cmpi eq, %arg1, %c0_i32 : i32
    %1 = arith.extui %0 : i1 to i32
    %c0_i32_0 = arith.constant 0 : i32
    %2 = arith.cmpi ne, %1, %c0_i32_0 : i32
    scf.if %2 {
      %cst_16 = arith.constant 0.000000e+00 : f32
      %42 = vector.broadcast %cst_16 : f32 to vector<1x1x1xf32>
      %c0_17 = arith.constant 0 : index
      %c0_18 = arith.constant 0 : index
      %c0_19 = arith.constant 0 : index
      %43 = vector.load %arg4[%c0_17, %c0_18, %c0_19] : memref<1x1x1xf32, #tpu.memory_space<vmem>>, vector<1x1x1xf32>
      tpu.vector_store %arg4[%c0_17, %c0_18, %c0_19], %42 {strides = array<i32>} : memref<1x1x1xf32, #tpu.memory_space<vmem>>, vector<1x1x1xf32>,
    } else {
    }
    %c0 = arith.constant 0 : index
    %c0_1 = arith.constant 0 : index
    %3 = vector.load %arg2[%c0, %c0_1] : memref<8x16xf32, #tpu.memory_space<vmem>>, vector<8x16xf32>
    %c0_2 = arith.constant 0 : index
    %c0_3 = arith.constant 0 : index
    %4 = vector.load %arg3[%c0_2, %c0_3] : memref<8x1xi32, #tpu.memory_space<vmem>>, vector<8x1xi32>
    %cst = arith.constant dense<0xFF800000> : vector<8xf32>
    %5 = vector.multi_reduction <maximumf>, %3, %cst [1] : vector<8x16xf32> to vector<8xf32>
    %6 = vector.shape_cast %5 : vector<8xf32> to vector<8x1xf32>
    %7 = tpu.iota {dimensions = array<i32: 1>} : vector<1x16xi32>
    %8 = vector.broadcast %7 : vector<1x16xi32> to vector<8x16xi32>
    %9 = vector.broadcast %4 : vector<8x1xi32> to vector<8x16xi32>
    %10 = arith.cmpi eq, %8, %9 : vector<8x16xi32>
    %c0_i32_4 = arith.constant 0 : i32
    %11 = arith.sitofp %c0_i32_4 : i32 to f32
    %12 = vector.broadcast %11 : f32 to vector<8x16xf32>
    %13 = arith.select %10, %3, %12 : vector<8x16xi1>, vector<8x16xf32>
    %cst_5 = arith.constant dense<0.000000e+00> : vector<8xf32>
    %14 = vector.multi_reduction <add>, %13, %cst_5 [1] : vector<8x16xf32> to vector<8xf32>
    %15 = vector.shape_cast %14 : vector<8xf32> to vector<8x1xf32>
    %16 = vector.broadcast %6 : vector<8x1xf32> to vector<8x16xf32>
    %17 = arith.subf %3, %16 : vector<8x16xf32>
    %18 = math.exp %17 : vector<8x16xf32>
    %cst_6 = arith.constant dense<0.000000e+00> : vector<8xf32>
    %19 = vector.multi_reduction <add>, %18, %cst_6 [1] : vector<8x16xf32> to vector<8xf32>
    %20 = vector.shape_cast %19 : vector<8xf32> to vector<8x1xf32>
    %21 = math.log %20 : vector<8x1xf32>
    %22 = arith.subf %6, %15 : vector<8x1xf32>
    %23 = arith.addf %21, %22 : vector<8x1xf32>
    %c1_i32 = arith.constant 1 : i32
    %24 = arith.muli %arg0, %c1_i32 : i32
    %25 = arith.addi %24, %arg1 : i32
    %26 = tpu.iota {dimensions = array<i32: 0>} : vector<8x1xi32>
    %c8_i32 = arith.constant 8 : i32
    %27 = arith.muli %25, %c8_i32 : i32
    %28 = vector.broadcast %27 : i32 to vector<8x1xi32>
    %29 = arith.addi %26, %28 : vector<8x1xi32>
    %c8_i32_7 = arith.constant 8 : i32
    %30 = vector.broadcast %c8_i32_7 : i32 to vector<8x1xi32>
    %31 = arith.cmpi slt, %29, %30 : vector<8x1xi32>
    %cst_8 = arith.constant 0.000000e+00 : f32
    %32 = vector.broadcast %cst_8 : f32 to vector<8x1xf32>
    %33 = arith.select %31, %23, %32 : vector<8x1xi1>, vector<8x1xf32>
    %c0_9 = arith.constant 0 : index
    %c0_10 = arith.constant 0 : index
    %c0_11 = arith.constant 0 : index
    %34 = vector.load %arg4[%c0_9, %c0_10, %c0_11] : memref<1x1x1xf32, #tpu.memory_space<vmem>>, vector<1x1x1xf32>
    %35 = vector.shape_cast %33 : vector<8x1xf32> to vector<1x8x1xf32>
    %cst_12 = arith.constant dense<0.000000e+00> : vector<1xf32>
    %36 = vector.multi_reduction <add>, %35, %cst_12 [1, 2] : vector<1x8x1xf32> to vector<1xf32>
    %37 = vector.shape_cast %36 : vector<1xf32> to vector<1x1x1xf32>
    %38 = vector.extract %37[0, 0, 0] : f32 from vector<1x1x1xf32>
    %39 = vector.broadcast %38 : f32 to vector<1x1x1xf32>
    %40 = arith.addf %34, %39 : vector<1x1x1xf32>
    %c0_13 = arith.constant 0 : index
    %c0_14 = arith.constant 0 : index
    %c0_15 = arith.constant 0 : index
    %41 = vector.load %arg4[%c0_13, %c0_14, %c0_15] : memref<1x1x1xf32, #tpu.memory_space<vmem>>, vector<1x1x1xf32>
    tpu.vector_store %arg4[%c0_13, %c0_14, %c0_15], %40 {strides = array<i32>} : memref<1x1x1xf32, #tpu.memory_space<vmem>>, vector<1x1x1xf32>,
    return
  }
  func.func @transform_0(%arg0: i32, %arg1: i32) -> (i32, i32) {
    %c1_i32 = arith.constant 1 : i32
    %0 = arith.muli %arg0, %c1_i32 : i32
    %1 = arith.addi %0, %arg1 : i32
    %c0_i32 = arith.constant 0 : i32
    %2 = arith.minsi %1, %c0_i32 : i32
    %c0_i32_0 = arith.constant 0 : i32
    %c0_i32_1 = arith.constant 0 : i32
    return %2, %c0_i32_0 : i32, i32
  }
  func.func @transform_1(%arg0: i32, %arg1: i32) -> (i32, i32) {
    %c1_i32 = arith.constant 1 : i32
    %0 = arith.muli %arg0, %c1_i32 : i32
    %1 = arith.addi %0, %arg1 : i32
    %c0_i32 = arith.constant 0 : i32
    %2 = arith.minsi %1, %c0_i32 : i32
    %c0_i32_0 = arith.constant 0 : i32
    %c0_i32_1 = arith.constant 0 : i32
    return %2, %c0_i32_0 : i32, i32
  }
  func.func @transform_2(%arg0: i32, %arg1: i32) -> (i32, i32, i32) {
    %c0_i32 = arith.constant 0 : i32
    %c0_i32_0 = arith.constant 0 : i32
    %c0_i32_1 = arith.constant 0 : i32
    return %arg0, %c0_i32, %c0_i32_0 : i32, i32, i32
  }
}

</mosaic_0001>

<bundles_post_ra>
// kernel: tpu_custom_call.1
= control target key start
LH: loop header
LB: loop body
LE: loop exit
PB: predicated region body
PF: predicated region fallthrough
CT: control target
= control target key end

     0   :  { %vm74_vm0 = vcmask 130048   ;;  %s218_s0 = inlined_call_operand.vmem [shape: f32[8,16], index: 0, kind: input, shape index: {}]   ;;  %s219_s1 = inlined_call_operand.vmem [shape: s32[8,1], index: 1, kind: input, shape index: {}]   ;;  %s220_s2 = inlined_call_operand.hbm [shape: f32[1,1,1], index: 2, kind: output, shape index: {}]  }
   0x1   :  { %v72_v0 = vld [vmem:[%s218_s0] sm:$0xff] }
   0x2   :  { %7 = vsyncpa [#allocation3], 0  ;;  %v75_v1 = vsel %vm74_vm0, %v72_v0, -inf  ;;  %v186_v2 = vmov 0   ;;  %v73_v3 = vld [vmem:[%s219_s1] sm:$0xff]  ;;  %v78_v9 = vlaneseq  ;;  %vm107_vm2 = vcmask 7168  }
   0x3   :  { %155 = vset.pattern.permute.xlu0 %v186_v2  ;;  %vm70_vm3 = vcmask 0   ;;  %v187_v21 = vmov 0.0   ;;  %s188_s0 = smov [#allocation2]   ;;  %s129_s15 = sshll.u32 %s220_s2, 4  ;;  %s130_s15 = int_to_ptr.hbm [resolvable:$true] %s129_s15 }
   0x4   :  { %76 = vmax.xlane.f32.xlu0 %v75_v1  ;;  %v79_v10 = vand.u32 127, %v78_v9  ;;  %71 = vst.msk [vmem:[#allocation2] sm:$0x1] %vm70_vm3, %v187_v21  ;;  %s127_s1 = sshll.u32 %s188_s0, 4  ;;  %s128_s1 = int_to_ptr.vmem [resolvable:$true] %s127_s1 }
   0xb   :  { %v106_v29 = vld [vmem:[#allocation2] sm:$0x1] }
  0x18   :  { %81 = vperm.xlu0 %155, %v73_v3  }
  0x77   :  { %v77_v4 = vpop.xlane.xlu0 %76 }
  0x78   :  { %v88_v5 = vsub.f32 %v72_v0, %v77_v4 }
  0x7a   :  { %v89_v6 = vmul.f32 1.442695, %v88_v5 }
  0x7c   :  { %156 = vpow2.f32 %v89_v6 }
  0x82   :  { %v157_v7 = vpop.eup %156 }
  0x83   :  { %v91_v8 = vsel %vm74_vm0, %v157_v7, 0.0 }
  0x84   :  { %92 = vadd.xlane.f32.xlu1 %v91_v8 }
  0x8a   :  { %v82_v11 = vpop.permute.xlu0 %81 }
  0x8b   :  { %vm83_vm1 = vcmp.eq.s32.totalorder %v79_v10, %v82_v11 }
  0x8c   :  { %v84_v12 = vsel %vm83_vm1, %v72_v0, 0.0 }
  0x8d   :  { %v85_v13 = vsel %vm74_vm0, %v84_v12, 0.0 }
  0x8e   :  { %86 = vadd.xlane.f32.xlu1 %v85_v13 }
  0xf7   :  { %v93_v14 = vpop.xlane.xlu1 %92 }
  0xf8   :  { %158 = vlog2.f32 %v93_v14 }
  0xfe   :  { %v159_v15 = vpop.eup %158 }
  0xff   :  { %v95_v17 = vmul.f32 0.6931472, %v159_v15 }
 0x101   :  { %v87_v16 = vpop.xlane.xlu1 %86 }
 0x102   :  { %v96_v18 = vsub.f32 %v77_v4, %v87_v16 }
 0x104   :  { %v97_v19 = vadd.f32 %v96_v18, %v95_v17 }
 0x106   :  { %v108_v20 = vsel %vm107_vm2, %v97_v19, 0.0 }
 0x107   :  { %109 = vadd.xlane.f32.xlu2 %v108_v20 }
 0x17a   :  { %v110_v22 = vpop.xlane.xlu2 %109 }
 0x17b   :  { %v111_v23 = vrot.slane %v110_v22, 4 }
 0x17d   :  { %v112_v24 = vadd.f32 %v111_v23, %v110_v22 }
 0x17f   :  { %v113_v25 = vrot.slane %v112_v24, 2 }
 0x181   :  { %v114_v26 = vadd.f32 %v113_v25, %v112_v24 }
 0x183   :  { %v115_v27 = vrot.slane %v114_v26, 1 }
 0x185   :  { %v116_v28 = vadd.f32 %v115_v27, %v114_v26 }
 0x187   :  { %150 = vpush %v116_v28 }
 0x1b8   :  { %s151_s16 = spop %150 }
 0x1b9   :  { %v118_v30 = vstv %s151_s16 }
 0x1ba   :  { %v119_v31 = vadd.f32 %v118_v30, %v106_v29 }
 0x1bc   :  { %121 = vst.msk [vmem:[#allocation2] sm:$0x1] %vm70_vm3, %v119_v31 }
 0x1bd   :  { %132 = dma.vmem_to_hbm [thread:$0]  %s128_s1, 16, %s130_s15, [#allocation3]  }
 0x1be   :  { %184 = dma.done.wait [#allocation3], 16  }
 0x1bf   :  { %185 = vsyncadd [#allocation3], 4294967280 }
 0x1c0   :  { %137 = vsyncpa [#allocation3], 1 }

</bundles_post_ra>
